<compile_context>
chip_gen: v7x
topology: tpu7x:2x2x1
jax: 0.10.0
libtpu: 0.0.40
codegen_flags: <defaults>
</compile_context>

<pallas_src>
import functools

import numpy as np
import jax
import jax.numpy as jnp
from jax import lax
from jax.experimental import pallas as pl
from jax.experimental.pallas import tpu as pltpu


def _down_kernel(x_ref, s_ref, w_ref, o_ref, *, th, H, W, Wo):
    """One (batch, row-tile) grid step.

    x_ref: (C, th, 2*W)    row-pair-merged input rows (lane axis = 2*W)
    s_ref: (2*W, Wo)       0/1 pooling-sum selection matrix
    w_ref: (C_out, C)      1x1 conv weight
    o_ref: (C_out, th, Wo) NCHW output block
    """
    s = s_ref[...]
    wk = w_ref[...]
    r = pl.program_id(1)

    # count_include_pad=False column factor: the last output column averages a
    # single element when W is odd.  Powers of two -> exact in f32 and bf16.
    wo = lax.broadcasted_iota(jnp.int32, (1, Wo), 1)
    col_scale = jnp.where(2 * wo + 1 < W, 0.5, 1.0)          # (1, Wo)

    for t in range(th):                                       # static unroll
        xt = x_ref[:, t, :]                                   # (C, 2*W)
        # 2x2 window *sums* for every channel of this output row: one MXU dot.
        pooled = jnp.dot(xt, s, preferred_element_type=jnp.float32)       # (C, Wo)
        # 1x1 conv: contract over channels (f32 accumulation).
        y = jnp.dot(wk, pooled.astype(wk.dtype),
                    preferred_element_type=jnp.float32)                   # (C_out, Wo)
        # row factor: the last output row averages a single row when H is odd.
        ho = r * th + t
        row_scale = jnp.where(2 * ho + 1 < H, 0.5, 1.0)
        o_ref[:, t, :] = (y * (row_scale * col_scale)).astype(o_ref.dtype)


def down_forward(x, w):
    """x: (B, C, H, W) NCHW (f32 or bf16).  w: (C_out, C, 1, 1) conv weight.
    Returns (B, C_out, ceil(H/2), ceil(W/2)) NCHW, matching Down.forward."""
    B, C, H, W = x.shape
    C_out = w.shape[0]
    Ho, Wo = -(-H // 2), -(-W // 2)
    dt = x.dtype
    itemsize = jnp.dtype(dt).itemsize

    # ---- layout plumbing: free reshapes only (one-row zero pad iff H odd) ----
    if H % 2:
        x = jnp.pad(x, ((0, 0), (0, 0), (0, 1), (0, 0)))
    xr = x.reshape(B, C, Ho, 2 * W)          # bitcast: merges each input row pair

    # 0/1 selection matrix implementing the 2x2 window *sum* over one merged row
    # pair laid out as [top(0..W-1) | bottom(0..W-1)].  Odd W: the missing right
    # column of the last window simply has no taps (zero contribution).
    q = np.arange(2 * W)[:, None]
    v = np.arange(Wo)[None, :]
    s_np = ((q < W) & (q // 2 == v)) | ((q >= W) & ((q - W) // 2 == v))
    s = jnp.asarray(s_np, dtype=dt)

    w2 = w.reshape(C_out, C).astype(dt)      # 1x1 conv weight as a plain matrix

    # ---- row-tile size (th) from a per-generation VMEM budget ----------------
    try:
        vmem_cap = int(pltpu.get_tpu_info().vmem_capacity_bytes)
    except Exception:                        # pragma: no cover
        vmem_cap = 64 * 1024 * 1024          # v7x-safe fallback
    const_bytes = (2 * W * Wo + C_out * C) * itemsize
    per_row_bytes = 2 * (C * 2 * W + C_out * Wo) * itemsize   # dbl-buffered streams
    budget = min(int(vmem_cap * 0.4), 24 * 1024 * 1024)

    th_cap = max(8, -(-Ho // 8) * 8)         # no point tiling past round_up(Ho, 8)
    th = 8                                   # multiple of 8 keeps (8,128) blocks legal
    while (th * 2 <= min(32, th_cap)
           and per_row_bytes * (th * 2) + 2 * const_bytes <= budget):
        th *= 2
    # v7x megacore: keep >= 2 parallel grid steps whenever possible.
    while th > 8 and B * (-(-Ho // th)) < 2:
        th //= 2
    n_r = -(-Ho // th)                       # partial last tile is fine: garbage
                                             # rows only feed discarded outputs.

    needed = per_row_bytes * th + 2 * const_bytes
    vmem_limit = min(int(vmem_cap * 0.9), max(needed + (8 << 20), 32 << 20))

    kernel = functools.partial(_down_kernel, th=th, H=H, W=W, Wo=Wo)
    return pl.pallas_call(
        kernel,
        out_shape=jax.ShapeDtypeStruct((B, C_out, Ho, Wo), dt),
        grid=(B, n_r),
        in_specs=[
            pl.BlockSpec((None, C, th, 2 * W), lambda b, r: (b, 0, r, 0)),
            pl.BlockSpec((2 * W, Wo), lambda b, r: (0, 0)),
            pl.BlockSpec((C_out, C), lambda b, r: (0, 0)),
        ],
        out_specs=pl.BlockSpec((None, C_out, th, Wo), lambda b, r: (b, 0, r, 0)),
        compiler_params=pltpu.CompilerParams(
            dimension_semantics=("parallel", "parallel"),
            vmem_limit_bytes=int(vmem_limit)),
    )(xr, s, w2)


def reference(x, w):
    """Pure-JAX reference of Down.forward (avg-pool 2, ceil_mode=True,
    count_include_pad=False, then 1x1 conv without bias)."""
    B, C, H, W = x.shape
    Ho, Wo = -(-H // 2), -(-W // 2)
    pad = ((0, 0), (0, 0), (0, 2 * Ho - H), (0, 2 * Wo - W))
    sums = lax.reduce_window(x, 0.0, lax.add, (1, 1, 2, 2), (1, 1, 2, 2), pad)
    cnts = lax.reduce_window(jnp.ones_like(x), 0.0, lax.add,
                             (1, 1, 2, 2), (1, 1, 2, 2), pad)
    pooled = sums / cnts
    return lax.conv_general_dilated(pooled, w, (1, 1), ((0, 0), (0, 0)),
                                    dimension_numbers=("NCHW", "OIHW", "NCHW"))


if __name__ == "__main__":
    key = jax.random.PRNGKey(0)
    kx, kw, kx2 = jax.random.split(key, 3)

    # Down(in_channels=4, chan_factor=2, bias=False) at batch=2, spatial=16
    B, C, H, W = 2, 4, 16, 16
    chan_factor = 2
    C_out = int(C * chan_factor)
    x = jax.random.normal(kx, (B, C, H, W), jnp.float32)
    w = 0.1 * jax.random.normal(kw, (C_out, C, 1, 1), jnp.float32)

    down = jax.jit(down_forward)
    y = jax.block_until_ready(down(x, w))
    y_ref = reference(x, w)
    assert y.shape == (B, C_out, H // 2, W // 2)
    assert jnp.allclose(y, y_ref, atol=1e-5, rtol=1e-5)

    # odd spatial extents exercise ceil_mode=True + count_include_pad=False
    x2 = jax.random.normal(kx2, (B, C, 15, 17), jnp.float32)
    y2 = jax.block_until_ready(down(x2, w))
    y2_ref = reference(x2, w)
    assert y2.shape == (B, C_out, 8, 9)
    assert jnp.allclose(y2, y2_ref, atol=1e-5, rtol=1e-5)

    # bf16 activations/weights: halves the dominant HBM stream (f32 MXU accum).
    xb = x.astype(jnp.bfloat16)
    wb = w.astype(jnp.bfloat16)
    y3 = jax.block_until_ready(down(xb, wb))
    y3_ref = reference(xb.astype(jnp.float32), wb.astype(jnp.float32))
    assert y3.dtype == jnp.bfloat16
    assert jnp.allclose(y3.astype(jnp.float32), y3_ref, atol=3e-2, rtol=3e-2)

    print("KERNEL_OK")
</pallas_src>

<mosaic_0001>
module attributes {stable_mosaic.version = 11 : i64} {
  func.func @_down_kernel(%arg0: i32, %arg1: i32, %arg2: memref<1x4x8x32xf32, #tpu.memory_space<vmem>>, %arg3: memref<32x8xf32, #tpu.memory_space<vmem>>, %arg4: memref<8x4xf32, #tpu.memory_space<vmem>>, %arg5: memref<1x8x8x8xf32, #tpu.memory_space<vmem>>) attributes {dimension_semantics = [#tpu.dimension_semantics<parallel>, #tpu.dimension_semantics<parallel>], iteration_bounds = array<i64: 2, 1>, scalar_prefetch = 0 : i64, scratch_operands = 0 : i64, tpu.core_type = #tpu.core_type<tc>, window_params = [{transform_indices = @transform_0, window_bounds = array<i64: 1, 4, 8, 32>}, {pipeline_mode = #tpu.pipeline_mode<synchronous>, transform_indices = @transform_1, window_bounds = array<i64: 32, 8>}, {pipeline_mode = #tpu.pipeline_mode<synchronous>, transform_indices = @transform_2, window_bounds = array<i64: 8, 4>}, {transform_indices = @transform_3, window_bounds = array<i64: 1, 8, 8, 8>}]} {
    %c0 = arith.constant 0 : index
    %c0_0 = arith.constant 0 : index
    %0 = vector.load %arg3[%c0, %c0_0] : memref<32x8xf32, #tpu.memory_space<vmem>>, vector<32x8xf32>
    %c0_1 = arith.constant 0 : index
    %c0_2 = arith.constant 0 : index
    %1 = vector.load %arg4[%c0_1, %c0_2] : memref<8x4xf32, #tpu.memory_space<vmem>>, vector<8x4xf32>
    %2 = tpu.iota {dimensions = array<i32: 1>} : vector<1x8xi32>
    %c2_i32 = arith.constant 2 : i32
    %3 = vector.broadcast %c2_i32 : i32 to vector<1x8xi32>
    %4 = arith.muli %3, %2 : vector<1x8xi32>
    %c1_i32 = arith.constant 1 : i32
    %5 = vector.broadcast %c1_i32 : i32 to vector<1x8xi32>
    %6 = arith.addi %4, %5 : vector<1x8xi32>
    %c16_i32 = arith.constant 16 : i32
    %7 = vector.broadcast %c16_i32 : i32 to vector<1x8xi32>
    %8 = arith.cmpi slt, %6, %7 : vector<1x8xi32>
    %cst = arith.constant 5.000000e-01 : f32
    %cst_3 = arith.constant 1.000000e+00 : f32
    %9 = vector.broadcast %cst : f32 to vector<1x8xf32>
    %10 = vector.broadcast %cst_3 : f32 to vector<1x8xf32>
    %11 = arith.select %8, %9, %10 : vector<1x8xi1>, vector<1x8xf32>
    %c0_4 = arith.constant 0 : index
    %c0_5 = arith.constant 0 : index
    %c0_6 = arith.constant 0 : index
    %c0_7 = arith.constant 0 : index
    %12 = vector.load %arg2[%c0_4, %c0_5, %c0_6, %c0_7] : memref<1x4x8x32xf32, #tpu.memory_space<vmem>>, vector<1x4x1x32xf32>
    %13 = vector.shape_cast %12 : vector<1x4x1x32xf32> to vector<4x32xf32>
    %cst_8 = arith.constant dense<0.000000e+00> : vector<4x8xf32>
    %14 = tpu.matmul %13, %0, %cst_8 {dimension_numbers = #tpu.dot_dimension_numbers<[1], [0], [0], [1], [0, 0, 1, 1], [], []>} : vector<4x32xf32>, vector<32x8xf32>, vector<4x8xf32> -> vector<4x8xf32>
    %cst_9 = arith.constant dense<0.000000e+00> : vector<8x8xf32>
    %15 = tpu.matmul %1, %14, %cst_9 {dimension_numbers = #tpu.dot_dimension_numbers<[1], [0], [0], [1], [0, 0, 1, 1], [], []>} : vector<8x4xf32>, vector<4x8xf32>, vector<8x8xf32> -> vector<8x8xf32>
    %c8_i32 = arith.constant 8 : i32
    %16 = arith.muli %arg1, %c8_i32 : i32
    %c0_i32 = arith.constant 0 : i32
    %17 = arith.addi %16, %c0_i32 : i32
    %c2_i32_10 = arith.constant 2 : i32
    %18 = arith.muli %c2_i32_10, %17 : i32
    %c1_i32_11 = arith.constant 1 : i32
    %19 = arith.addi %18, %c1_i32_11 : i32
    %c16_i32_12 = arith.constant 16 : i32
    %20 = arith.cmpi slt, %19, %c16_i32_12 : i32
    %cst_13 = arith.constant 5.000000e-01 : f32
    %cst_14 = arith.constant 1.000000e+00 : f32
    %21 = arith.select %20, %cst_13, %cst_14 : f32
    %22 = vector.broadcast %21 : f32 to vector<1x8xf32>
    %23 = arith.mulf %22, %11 : vector<1x8xf32>
    %24 = vector.broadcast %23 : vector<1x8xf32> to vector<8x8xf32>
    %25 = arith.mulf %15, %24 : vector<8x8xf32>
    %c0_15 = arith.constant 0 : index
    %c0_16 = arith.constant 0 : index
    %c0_17 = arith.constant 0 : index
    %c0_18 = arith.constant 0 : index
    %26 = vector.load %arg5[%c0_15, %c0_16, %c0_17, %c0_18] : memref<1x8x8x8xf32, #tpu.memory_space<vmem>>, vector<1x8x1x8xf32>
    %27 = vector.shape_cast %26 : vector<1x8x1x8xf32> to vector<8x8xf32>
    %28 = vector.shape_cast %25 : vector<8x8xf32> to vector<1x8x1x8xf32>
    tpu.vector_store %arg5[%c0_15, %c0_16, %c0_17, %c0_18], %28 {strides = array<i32>} : memref<1x8x8x8xf32, #tpu.memory_space<vmem>>, vector<1x8x1x8xf32>,
    %c0_19 = arith.constant 0 : index
    %c0_20 = arith.constant 0 : index
    %c1 = arith.constant 1 : index
    %c0_21 = arith.constant 0 : index
    %29 = vector.load %arg2[%c0_19, %c0_20, %c1, %c0_21] : memref<1x4x8x32xf32, #tpu.memory_space<vmem>>, vector<1x4x1x32xf32>
    %30 = vector.shape_cast %29 : vector<1x4x1x32xf32> to vector<4x32xf32>
    %cst_22 = arith.constant dense<0.000000e+00> : vector<4x8xf32>
    %31 = tpu.matmul %30, %0, %cst_22 {dimension_numbers = #tpu.dot_dimension_numbers<[1], [0], [0], [1], [0, 0, 1, 1], [], []>} : vector<4x32xf32>, vector<32x8xf32>, vector<4x8xf32> -> vector<4x8xf32>
    %cst_23 = arith.constant dense<0.000000e+00> : vector<8x8xf32>
    %32 = tpu.matmul %1, %31, %cst_23 {dimension_numbers = #tpu.dot_dimension_numbers<[1], [0], [0], [1], [0, 0, 1, 1], [], []>} : vector<8x4xf32>, vector<4x8xf32>, vector<8x8xf32> -> vector<8x8xf32>
    %c8_i32_24 = arith.constant 8 : i32
    %33 = arith.muli %arg1, %c8_i32_24 : i32
    %c1_i32_25 = arith.constant 1 : i32
    %34 = arith.addi %33, %c1_i32_25 : i32
    %c2_i32_26 = arith.constant 2 : i32
    %35 = arith.muli %c2_i32_26, %34 : i32
    %c1_i32_27 = arith.constant 1 : i32
    %36 = arith.addi %35, %c1_i32_27 : i32
    %c16_i32_28 = arith.constant 16 : i32
    %37 = arith.cmpi slt, %36, %c16_i32_28 : i32
    %cst_29 = arith.constant 5.000000e-01 : f32
    %cst_30 = arith.constant 1.000000e+00 : f32
    %38 = arith.select %37, %cst_29, %cst_30 : f32
    %39 = vector.broadcast %38 : f32 to vector<1x8xf32>
    %40 = arith.mulf %39, %11 : vector<1x8xf32>
    %41 = vector.broadcast %40 : vector<1x8xf32> to vector<8x8xf32>
    %42 = arith.mulf %32, %41 : vector<8x8xf32>
    %c0_31 = arith.constant 0 : index
    %c0_32 = arith.constant 0 : index
    %c1_33 = arith.constant 1 : index
    %c0_34 = arith.constant 0 : index
    %43 = vector.load %arg5[%c0_31, %c0_32, %c1_33, %c0_34] : memref<1x8x8x8xf32, #tpu.memory_space<vmem>>, vector<1x8x1x8xf32>
    %44 = vector.shape_cast %43 : vector<1x8x1x8xf32> to vector<8x8xf32>
    %45 = vector.shape_cast %42 : vector<8x8xf32> to vector<1x8x1x8xf32>
    tpu.vector_store %arg5[%c0_31, %c0_32, %c1_33, %c0_34], %45 {strides = array<i32>} : memref<1x8x8x8xf32, #tpu.memory_space<vmem>>, vector<1x8x1x8xf32>,
    %c0_35 = arith.constant 0 : index
    %c0_36 = arith.constant 0 : index
    %c2 = arith.constant 2 : index
    %c0_37 = arith.constant 0 : index
    %46 = vector.load %arg2[%c0_35, %c0_36, %c2, %c0_37] : memref<1x4x8x32xf32, #tpu.memory_space<vmem>>, vector<1x4x1x32xf32>
    %47 = vector.shape_cast %46 : vector<1x4x1x32xf32> to vector<4x32xf32>
    %cst_38 = arith.constant dense<0.000000e+00> : vector<4x8xf32>
    %48 = tpu.matmul %47, %0, %cst_38 {dimension_numbers = #tpu.dot_dimension_numbers<[1], [0], [0], [1], [0, 0, 1, 1], [], []>} : vector<4x32xf32>, vector<32x8xf32>, vector<4x8xf32> -> vector<4x8xf32>
    %cst_39 = arith.constant dense<0.000000e+00> : vector<8x8xf32>
    %49 = tpu.matmul %1, %48, %cst_39 {dimension_numbers = #tpu.dot_dimension_numbers<[1], [0], [0], [1], [0, 0, 1, 1], [], []>} : vector<8x4xf32>, vector<4x8xf32>, vector<8x8xf32> -> vector<8x8xf32>
    %c8_i32_40 = arith.constant 8 : i32
    %50 = arith.muli %arg1, %c8_i32_40 : i32
    %c2_i32_41 = arith.constant 2 : i32
    %51 = arith.addi %50, %c2_i32_41 : i32
    %c2_i32_42 = arith.constant 2 : i32
    %52 = arith.muli %c2_i32_42, %51 : i32
    %c1_i32_43 = arith.constant 1 : i32
    %53 = arith.addi %52, %c1_i32_43 : i32
    %c16_i32_44 = arith.constant 16 : i32
    %54 = arith.cmpi slt, %53, %c16_i32_44 : i32
    %cst_45 = arith.constant 5.000000e-01 : f32
    %cst_46 = arith.constant 1.000000e+00 : f32
    %55 = arith.select %54, %cst_45, %cst_46 : f32
    %56 = vector.broadcast %55 : f32 to vector<1x8xf32>
    %57 = arith.mulf %56, %11 : vector<1x8xf32>
    %58 = vector.broadcast %57 : vector<1x8xf32> to vector<8x8xf32>
    %59 = arith.mulf %49, %58 : vector<8x8xf32>
    %c0_47 = arith.constant 0 : index
    %c0_48 = arith.constant 0 : index
    %c2_49 = arith.constant 2 : index
    %c0_50 = arith.constant 0 : index
    %60 = vector.load %arg5[%c0_47, %c0_48, %c2_49, %c0_50] : memref<1x8x8x8xf32, #tpu.memory_space<vmem>>, vector<1x8x1x8xf32>
    %61 = vector.shape_cast %60 : vector<1x8x1x8xf32> to vector<8x8xf32>
    %62 = vector.shape_cast %59 : vector<8x8xf32> to vector<1x8x1x8xf32>
    tpu.vector_store %arg5[%c0_47, %c0_48, %c2_49, %c0_50], %62 {strides = array<i32>} : memref<1x8x8x8xf32, #tpu.memory_space<vmem>>, vector<1x8x1x8xf32>,
    %c0_51 = arith.constant 0 : index
    %c0_52 = arith.constant 0 : index
    %c3 = arith.constant 3 : index
    %c0_53 = arith.constant 0 : index
    %63 = vector.load %arg2[%c0_51, %c0_52, %c3, %c0_53] : memref<1x4x8x32xf32, #tpu.memory_space<vmem>>, vector<1x4x1x32xf32>
    %64 = vector.shape_cast %63 : vector<1x4x1x32xf32> to vector<4x32xf32>
    %cst_54 = arith.constant dense<0.000000e+00> : vector<4x8xf32>
    %65 = tpu.matmul %64, %0, %cst_54 {dimension_numbers = #tpu.dot_dimension_numbers<[1], [0], [0], [1], [0, 0, 1, 1], [], []>} : vector<4x32xf32>, vector<32x8xf32>, vector<4x8xf32> -> vector<4x8xf32>
    %cst_55 = arith.constant dense<0.000000e+00> : vector<8x8xf32>
    %66 = tpu.matmul %1, %65, %cst_55 {dimension_numbers = #tpu.dot_dimension_numbers<[1], [0], [0], [1], [0, 0, 1, 1], [], []>} : vector<8x4xf32>, vector<4x8xf32>, vector<8x8xf32> -> vector<8x8xf32>
    %c8_i32_56 = arith.constant 8 : i32
    %67 = arith.muli %arg1, %c8_i32_56 : i32
    %c3_i32 = arith.constant 3 : i32
    %68 = arith.addi %67, %c3_i32 : i32
    %c2_i32_57 = arith.constant 2 : i32
    %69 = arith.muli %c2_i32_57, %68 : i32
    %c1_i32_58 = arith.constant 1 : i32
    %70 = arith.addi %69, %c1_i32_58 : i32
    %c16_i32_59 = arith.constant 16 : i32
    %71 = arith.cmpi slt, %70, %c16_i32_59 : i32
    %cst_60 = arith.constant 5.000000e-01 : f32
    %cst_61 = arith.constant 1.000000e+00 : f32
    %72 = arith.select %71, %cst_60, %cst_61 : f32
    %73 = vector.broadcast %72 : f32 to vector<1x8xf32>
    %74 = arith.mulf %73, %11 : vector<1x8xf32>
    %75 = vector.broadcast %74 : vector<1x8xf32> to vector<8x8xf32>
    %76 = arith.mulf %66, %75 : vector<8x8xf32>
    %c0_62 = arith.constant 0 : index
    %c0_63 = arith.constant 0 : index
    %c3_64 = arith.constant 3 : index
    %c0_65 = arith.constant 0 : index
    %77 = vector.load %arg5[%c0_62, %c0_63, %c3_64, %c0_65] : memref<1x8x8x8xf32, #tpu.memory_space<vmem>>, vector<1x8x1x8xf32>
    %78 = vector.shape_cast %77 : vector<1x8x1x8xf32> to vector<8x8xf32>
    %79 = vector.shape_cast %76 : vector<8x8xf32> to vector<1x8x1x8xf32>
    tpu.vector_store %arg5[%c0_62, %c0_63, %c3_64, %c0_65], %79 {strides = array<i32>} : memref<1x8x8x8xf32, #tpu.memory_space<vmem>>, vector<1x8x1x8xf32>,
    %c0_66 = arith.constant 0 : index
    %c0_67 = arith.constant 0 : index
    %c4 = arith.constant 4 : index
    %c0_68 = arith.constant 0 : index
    %80 = vector.load %arg2[%c0_66, %c0_67, %c4, %c0_68] : memref<1x4x8x32xf32, #tpu.memory_space<vmem>>, vector<1x4x1x32xf32>
    %81 = vector.shape_cast %80 : vector<1x4x1x32xf32> to vector<4x32xf32>
    %cst_69 = arith.constant dense<0.000000e+00> : vector<4x8xf32>
    %82 = tpu.matmul %81, %0, %cst_69 {dimension_numbers = #tpu.dot_dimension_numbers<[1], [0], [0], [1], [0, 0, 1, 1], [], []>} : vector<4x32xf32>, vector<32x8xf32>, vector<4x8xf32> -> vector<4x8xf32>
    %cst_70 = arith.constant dense<0.000000e+00> : vector<8x8xf32>
    %83 = tpu.matmul %1, %82, %cst_70 {dimension_numbers = #tpu.dot_dimension_numbers<[1], [0], [0], [1], [0, 0, 1, 1], [], []>} : vector<8x4xf32>, vector<4x8xf32>, vector<8x8xf32> -> vector<8x8xf32>
    %c8_i32_71 = arith.constant 8 : i32
    %84 = arith.muli %arg1, %c8_i32_71 : i32
    %c4_i32 = arith.constant 4 : i32
    %85 = arith.addi %84, %c4_i32 : i32
    %c2_i32_72 = arith.constant 2 : i32
    %86 = arith.muli %c2_i32_72, %85 : i32
    %c1_i32_73 = arith.constant 1 : i32
    %87 = arith.addi %86, %c1_i32_73 : i32
    %c16_i32_74 = arith.constant 16 : i32
    %88 = arith.cmpi slt, %87, %c16_i32_74 : i32
    %cst_75 = arith.constant 5.000000e-01 : f32
    %cst_76 = arith.constant 1.000000e+00 : f32
    %89 = arith.select %88, %cst_75, %cst_76 : f32
    %90 = vector.broadcast %89 : f32 to vector<1x8xf32>
    %91 = arith.mulf %90, %11 : vector<1x8xf32>
    %92 = vector.broadcast %91 : vector<1x8xf32> to vector<8x8xf32>
    %93 = arith.mulf %83, %92 : vector<8x8xf32>
    %c0_77 = arith.constant 0 : index
    %c0_78 = arith.constant 0 : index
    %c4_79 = arith.constant 4 : index
    %c0_80 = arith.constant 0 : index
    %94 = vector.load %arg5[%c0_77, %c0_78, %c4_79, %c0_80] : memref<1x8x8x8xf32, #tpu.memory_space<vmem>>, vector<1x8x1x8xf32>
    %95 = vector.shape_cast %94 : vector<1x8x1x8xf32> to vector<8x8xf32>
    %96 = vector.shape_cast %93 : vector<8x8xf32> to vector<1x8x1x8xf32>
    tpu.vector_store %arg5[%c0_77, %c0_78, %c4_79, %c0_80], %96 {strides = array<i32>} : memref<1x8x8x8xf32, #tpu.memory_space<vmem>>, vector<1x8x1x8xf32>,
    %c0_81 = arith.constant 0 : index
    %c0_82 = arith.constant 0 : index
    %c5 = arith.constant 5 : index
    %c0_83 = arith.constant 0 : index
    %97 = vector.load %arg2[%c0_81, %c0_82, %c5, %c0_83] : memref<1x4x8x32xf32, #tpu.memory_space<vmem>>, vector<1x4x1x32xf32>
    %98 = vector.shape_cast %97 : vector<1x4x1x32xf32> to vector<4x32xf32>
    %cst_84 = arith.constant dense<0.000000e+00> : vector<4x8xf32>
    %99 = tpu.matmul %98, %0, %cst_84 {dimension_numbers = #tpu.dot_dimension_numbers<[1], [0], [0], [1], [0, 0, 1, 1], [], []>} : vector<4x32xf32>, vector<32x8xf32>, vector<4x8xf32> -> vector<4x8xf32>
    %cst_85 = arith.constant dense<0.000000e+00> : vector<8x8xf32>
    %100 = tpu.matmul %1, %99, %cst_85 {dimension_numbers = #tpu.dot_dimension_numbers<[1], [0], [0], [1], [0, 0, 1, 1], [], []>} : vector<8x4xf32>, vector<4x8xf32>, vector<8x8xf32> -> vector<8x8xf32>
    %c8_i32_86 = arith.constant 8 : i32
    %101 = arith.muli %arg1, %c8_i32_86 : i32
    %c5_i32 = arith.constant 5 : i32
    %102 = arith.addi %101, %c5_i32 : i32
    %c2_i32_87 = arith.constant 2 : i32
    %103 = arith.muli %c2_i32_87, %102 : i32
    %c1_i32_88 = arith.constant 1 : i32
    %104 = arith.addi %103, %c1_i32_88 : i32
    %c16_i32_89 = arith.constant 16 : i32
    %105 = arith.cmpi slt, %104, %c16_i32_89 : i32
    %cst_90 = arith.constant 5.000000e-01 : f32
    %cst_91 = arith.constant 1.000000e+00 : f32
    %106 = arith.select %105, %cst_90, %cst_91 : f32
    %107 = vector.broadcast %106 : f32 to vector<1x8xf32>
    %108 = arith.mulf %107, %11 : vector<1x8xf32>
    %109 = vector.broadcast %108 : vector<1x8xf32> to vector<8x8xf32>
    %110 = arith.mulf %100, %109 : vector<8x8xf32>
    %c0_92 = arith.constant 0 : index
    %c0_93 = arith.constant 0 : index
    %c5_94 = arith.constant 5 : index
    %c0_95 = arith.constant 0 : index
    %111 = vector.load %arg5[%c0_92, %c0_93, %c5_94, %c0_95] : memref<1x8x8x8xf32, #tpu.memory_space<vmem>>, vector<1x8x1x8xf32>
    %112 = vector.shape_cast %111 : vector<1x8x1x8xf32> to vector<8x8xf32>
    %113 = vector.shape_cast %110 : vector<8x8xf32> to vector<1x8x1x8xf32>
    tpu.vector_store %arg5[%c0_92, %c0_93, %c5_94, %c0_95], %113 {strides = array<i32>} : memref<1x8x8x8xf32, #tpu.memory_space<vmem>>, vector<1x8x1x8xf32>,
    %c0_96 = arith.constant 0 : index
    %c0_97 = arith.constant 0 : index
    %c6 = arith.constant 6 : index
    %c0_98 = arith.constant 0 : index
    %114 = vector.load %arg2[%c0_96, %c0_97, %c6, %c0_98] : memref<1x4x8x32xf32, #tpu.memory_space<vmem>>, vector<1x4x1x32xf32>
    %115 = vector.shape_cast %114 : vector<1x4x1x32xf32> to vector<4x32xf32>
    %cst_99 = arith.constant dense<0.000000e+00> : vector<4x8xf32>
    %116 = tpu.matmul %115, %0, %cst_99 {dimension_numbers = #tpu.dot_dimension_numbers<[1], [0], [0], [1], [0, 0, 1, 1], [], []>} : vector<4x32xf32>, vector<32x8xf32>, vector<4x8xf32> -> vector<4x8xf32>
    %cst_100 = arith.constant dense<0.000000e+00> : vector<8x8xf32>
    %117 = tpu.matmul %1, %116, %cst_100 {dimension_numbers = #tpu.dot_dimension_numbers<[1], [0], [0], [1], [0, 0, 1, 1], [], []>} : vector<8x4xf32>, vector<4x8xf32>, vector<8x8xf32> -> vector<8x8xf32>
    %c8_i32_101 = arith.constant 8 : i32
    %118 = arith.muli %arg1, %c8_i32_101 : i32
    %c6_i32 = arith.constant 6 : i32
    %119 = arith.addi %118, %c6_i32 : i32
    %c2_i32_102 = arith.constant 2 : i32
    %120 = arith.muli %c2_i32_102, %119 : i32
    %c1_i32_103 = arith.constant 1 : i32
    %121 = arith.addi %120, %c1_i32_103 : i32
    %c16_i32_104 = arith.constant 16 : i32
    %122 = arith.cmpi slt, %121, %c16_i32_104 : i32
    %cst_105 = arith.constant 5.000000e-01 : f32
    %cst_106 = arith.constant 1.000000e+00 : f32
    %123 = arith.select %122, %cst_105, %cst_106 : f32
    %124 = vector.broadcast %123 : f32 to vector<1x8xf32>
    %125 = arith.mulf %124, %11 : vector<1x8xf32>
    %126 = vector.broadcast %125 : vector<1x8xf32> to vector<8x8xf32>
    %127 = arith.mulf %117, %126 : vector<8x8xf32>
    %c0_107 = arith.constant 0 : index
    %c0_108 = arith.constant 0 : index
    %c6_109 = arith.constant 6 : index
    %c0_110 = arith.constant 0 : index
    %128 = vector.load %arg5[%c0_107, %c0_108, %c6_109, %c0_110] : memref<1x8x8x8xf32, #tpu.memory_space<vmem>>, vector<1x8x1x8xf32>
    %129 = vector.shape_cast %128 : vector<1x8x1x8xf32> to vector<8x8xf32>
    %130 = vector.shape_cast %127 : vector<8x8xf32> to vector<1x8x1x8xf32>
    tpu.vector_store %arg5[%c0_107, %c0_108, %c6_109, %c0_110], %130 {strides = array<i32>} : memref<1x8x8x8xf32, #tpu.memory_space<vmem>>, vector<1x8x1x8xf32>,
    %c0_111 = arith.constant 0 : index
    %c0_112 = arith.constant 0 : index
    %c7 = arith.constant 7 : index
    %c0_113 = arith.constant 0 : index
    %131 = vector.load %arg2[%c0_111, %c0_112, %c7, %c0_113] : memref<1x4x8x32xf32, #tpu.memory_space<vmem>>, vector<1x4x1x32xf32>
    %132 = vector.shape_cast %131 : vector<1x4x1x32xf32> to vector<4x32xf32>
    %cst_114 = arith.constant dense<0.000000e+00> : vector<4x8xf32>
    %133 = tpu.matmul %132, %0, %cst_114 {dimension_numbers = #tpu.dot_dimension_numbers<[1], [0], [0], [1], [0, 0, 1, 1], [], []>} : vector<4x32xf32>, vector<32x8xf32>, vector<4x8xf32> -> vector<4x8xf32>
    %cst_115 = arith.constant dense<0.000000e+00> : vector<8x8xf32>
    %134 = tpu.matmul %1, %133, %cst_115 {dimension_numbers = #tpu.dot_dimension_numbers<[1], [0], [0], [1], [0, 0, 1, 1], [], []>} : vector<8x4xf32>, vector<4x8xf32>, vector<8x8xf32> -> vector<8x8xf32>
    %c8_i32_116 = arith.constant 8 : i32
    %135 = arith.muli %arg1, %c8_i32_116 : i32
    %c7_i32 = arith.constant 7 : i32
    %136 = arith.addi %135, %c7_i32 : i32
    %c2_i32_117 = arith.constant 2 : i32
    %137 = arith.muli %c2_i32_117, %136 : i32
    %c1_i32_118 = arith.constant 1 : i32
    %138 = arith.addi %137, %c1_i32_118 : i32
    %c16_i32_119 = arith.constant 16 : i32
    %139 = arith.cmpi slt, %138, %c16_i32_119 : i32
    %cst_120 = arith.constant 5.000000e-01 : f32
    %cst_121 = arith.constant 1.000000e+00 : f32
    %140 = arith.select %139, %cst_120, %cst_121 : f32
    %141 = vector.broadcast %140 : f32 to vector<1x8xf32>
    %142 = arith.mulf %141, %11 : vector<1x8xf32>
    %143 = vector.broadcast %142 : vector<1x8xf32> to vector<8x8xf32>
    %144 = arith.mulf %134, %143 : vector<8x8xf32>
    %c0_122 = arith.constant 0 : index
    %c0_123 = arith.constant 0 : index
    %c7_124 = arith.constant 7 : index
    %c0_125 = arith.constant 0 : index
    %145 = vector.load %arg5[%c0_122, %c0_123, %c7_124, %c0_125] : memref<1x8x8x8xf32, #tpu.memory_space<vmem>>, vector<1x8x1x8xf32>
    %146 = vector.shape_cast %145 : vector<1x8x1x8xf32> to vector<8x8xf32>
    %147 = vector.shape_cast %144 : vector<8x8xf32> to vector<1x8x1x8xf32>
    tpu.vector_store %arg5[%c0_122, %c0_123, %c7_124, %c0_125], %147 {strides = array<i32>} : memref<1x8x8x8xf32, #tpu.memory_space<vmem>>, vector<1x8x1x8xf32>,
    return
  }
  func.func @transform_0(%arg0: i32, %arg1: i32) -> (i32, i32, i32, i32) {
    %c0_i32 = arith.constant 0 : i32
    %c0_i32_0 = arith.constant 0 : i32
    %c0_i32_1 = arith.constant 0 : i32
    return %arg0, %c0_i32, %arg1, %c0_i32_0 : i32, i32, i32, i32
  }
  func.func @transform_1(%arg0: i32, %arg1: i32) -> (i32, i32) {
    %c0_i32 = arith.constant 0 : i32
    %c0_i32_0 = arith.constant 0 : i32
    %c0_i32_1 = arith.constant 0 : i32
    return %c0_i32, %c0_i32_0 : i32, i32
  }
  func.func @transform_2(%arg0: i32, %arg1: i32) -> (i32, i32) {
    %c0_i32 = arith.constant 0 : i32
    %c0_i32_0 = arith.constant 0 : i32
    %c0_i32_1 = arith.constant 0 : i32
    return %c0_i32, %c0_i32_0 : i32, i32
  }
  func.func @transform_3(%arg0: i32, %arg1: i32) -> (i32, i32, i32, i32) {
    %c0_i32 = arith.constant 0 : i32
    %c0_i32_0 = arith.constant 0 : i32
    %c0_i32_1 = arith.constant 0 : i32
    return %arg0, %c0_i32, %arg1, %c0_i32_0 : i32, i32, i32, i32
  }
}

</mosaic_0001>

<bundles_post_ra>
// kernel: down_forward.1
= control target key start
LH: loop header
LB: loop body
LE: loop exit
PB: predicated region body
PF: predicated region fallthrough
CT: control target
= control target key end

     0   :  { %8 = vsyncpa [#allocation3], 0  ;;  %s3106_s0 = inlined_call_operand.vmem [shape: f32[2,4,8,32], index: 0, kind: input, shape index: {}]   ;;  %s3107_s1 = inlined_call_operand.vmem [shape: f32[32,8], index: 1, kind: input, shape index: {}]   ;;  %s3108_s2 = inlined_call_operand.vmem [shape: f32[8,4], index: 2, kind: input, shape index: {}]   ;;  %s3109_s3 = inlined_call_operand.hbm [shape: f32[2,8,8,8], index: 3, kind: output, shape index: {}]  }
   0x1   :  { %10 = vsyncpa [#allocation3 + $0x1], 0  ;;  %s2613_s12 = smov 0   ;;  %s2615_s13 = smov 0  }
   0x2   :  { %s2617_s14 = smov 0   ;;  %s2619_s15 = smov 0  }
   0x3   :  { %s2621_s16 = smov 0   ;;  %s2623_s17 = smov 0  }
   0x4 LB: > { %s2172_s18 = sadd.s32 4294967295, %s2583_s17   ;;  %s2173_s19 = sadd.s32 4294967294, %s2583_s17   ;;  %s2583_s17 = sphi %s2623_s17, %s16_s17   ;;  %s2579_s16 = sphi %s2621_s16, %s3116_s16   ;;  %s2575_s15 = sphi %s2619_s15, %s3115_s15   ;;  %s2571_s14 = sphi %s2617_s14, %s3114_s14   ;;  %s2567_s13 = sphi %s2615_s13, %s3113_s13   ;;  %s2563_s12 = sphi %s2613_s12, %s3112_s12  }
   0x5   : > { %s28_s20 = sadd.s32 1, %s2579_s16  ;;  %s107_s21 = sadd.s32 1, %s2571_s14 }
   0x6   : > { %p30_p0 = scmp.ge.s32.totalorder %s28_s20, 2  ;;  %p117_p1 = scmp.ne.s32.totalorder %s2571_s14, %s2567_s13 }
   0x7   : > { %p118_p2 = scmp.eq.s32.totalorder %s2172_s18, 1  ;;  %p123_p3 = scmp.ne.s32.totalorder %s2567_s13, %s2563_s12 }
   0x8   : > { %s3118_s20 = smov (%p30_p0, %s28_s20), 0  ;;  %p124_p5 = scmp.eq.s32.totalorder %s2173_s19, 1 }
   0x9   : > { %p2653_p4 = por %p118_p2, %p117_p1  ;;  %s102_s23 = ssub.s32 %s2579_s16, %s3118_s20 }
   0xa   : > { %p2176_p6 = scmp.ge.s32.totalorder %s2583_s17, 1  ;;  %p105_p7 = scmp.eq.s32.totalorder %s102_s23, 0 }
   0xb   : > { %p2660_p8 = por %p124_p5, %p123_p3  ;;  %p159_p9 = scmp.lt.s32.totalorder %s2583_s17, 3 }
   0xc   : > { %s2666_s25 = scalar_select %p105_p7, %s2571_s14, %s107_s21  }
   0xd   : > { %p160_p10 = pnand %p2176_p6, %p159_p9 }
   0xe   : > { %v194_v0 = vld [vmem:[%s3107_s1] sm:$0xff] (!%p160_p10)  ;;  %v195_v1 = vld [vmem:[%s3107_s1 + $0x8] sm:$0xff] (!%p160_p10)  ;;  %v196_v2 = vld [vmem:[%s3107_s1 + $0x10] sm:$0xff] (!%p160_p10)  ;;  %v2585_v3 = vmov (!%p160_p10), 0.0|0.0   ;;  %vm2586_vm0 = vmmov (!%p160_p10), 0   ;;  %v2587_v6 = vmov (!%p160_p10), 0.0   ;;  %v199_v41 = vlaneseq (!%p160_p10) }
   0xf   : > { %163 = sbr.rel (%p160_p10) target bundleno = 1819 (0x71b), region = 32  ;;  %2395 = vmatprep.subr.bf16.mxu0 (!%p160_p10), %v2585_v3  ;;  %v2678_v4 = vpack.c.bf16 (!%p160_p10), %v195_v1, %v194_v0  ;;  %v197_v5 = vld [vmem:[%s3107_s1 + $0x18] sm:$0xff] (!%p160_p10)  ;;  %2275 = vmatprep.mubr.msk.f32.mxu0 (!%p160_p10), %vm2586_vm0, %v2587_v6  ;;  %p186_p11 = scmp.lt.s32.totalorder (!%p160_p10), %s2575_s15, 1  ;;  %vm214_vm1 = vcmask (!%p160_p10), 1041409   ;;  %vm217_vm2 = vcmask (!%p160_p10), 1042434   ;;  %vm220_vm3 = vcmask (!%p160_p10), 1043459  }
  0x10   : > { %2278 = vmatprep.subr.mxu1 (!%p160_p10), %v2587_v6  ;;  %2280 = vmatprep.mubr.msk.f32.mxu1 (!%p160_p10), %vm2586_vm0, %v2587_v6  ;;  %v2690_v7 = vpack.c.bf16 (!%p160_p10), %v197_v5, %v196_v2  ;;  %vm222_vm4 = vcmask (!%p160_p10), 261120   ;;  %vm299_vm5 = vcmask (!%p160_p10), 1043456   ;;  %v2717_v22 = vld [vmem:[%s3108_s2] sm:$0xff] (!%p160_p10)  ;;  %vm295_vm6 = vcmask (!%p160_p10), 31744   ;;  %s183_s21 = sand.u32 (!%p160_p10), 1, %s2567_s13   ;;  %s2210_s27 = sshll.u32 (!%p160_p10), %s2575_s15, 10 }
  0x11   : > { %2397 = vmatpush3.bf16.msra.mxu0 (!%p160_p10), %v2678_v4  ;;  %v200_v42 = vand.u32 (!%p160_p10), 127, %v199_v41  ;;  %v2588_v45 = vmov (!%p160_p10), 1966171168   ;;  %v2589_v47 = vmov (!%p160_p10), 1.0   ;;  %v386_v50 = vshrl.u32 (!%p160_p10), %v199_v41, 7  ;;  %s2177_s23 = sshll.u32 (!%p160_p10), %s183_s21, 6  ;;  %s3046_s4 = scalar_lea.hbm (!%p160_p10), %s3109_s3, %s2210_s27 }
  0x12   : > { %2398 = vmatprep.subr.bf16.mxu0 (!%p160_p10), %v2585_v3  ;;  %v383_v46 = vunpack.c.l.s4 (!%p160_p10), %v2588_v45  ;;  %vm438_vm8 = vcmask (!%p160_p10), 57344   ;;  %s2763_s26 = scalar_lea.vmem (!%p160_p10), [#allocation2], %s2177_s23  ;;  %s2590_s6 = smov (!%p160_p10), [#allocation2]  }
  0x13   : > { %v201_v43 = vmul.u32 (!%p160_p10), 2, %v200_v42  ;;  %s2094_s28 = sshll.u32 (!%p160_p10), %s2763_s26, 4  ;;  %s3048_s28 = int_to_ptr.vmem [resolvable:$true] %s2094_s28 }
  0x14   : > { %v384_v49 = vunpack.c.0.s8 (!%p160_p10), %v383_v46  ;;  %s2505_s5 = scalar_lea.vmem (!%p160_p10), %s3048_s28, 1024 }
  0x15   : > { %2400 = vmatpush3.bf16.msra.mxu0 (!%p160_p10), %v2690_v7  ;;  %v202_v44 = vadd.s32 (!%p160_p10), 1, %v201_v43  ;;  %p2506_p12 = scmp.ne.s32.totalorder (!%p160_p10), %s3048_s28, %s2505_s5 }
  0x16   : > { %s187_s7 = scalar_select %p186_p11, %s2575_s15, 1  ;;  %2294 = vmatprep.subr.mxu0 %v2587_v6  ;;  %v2753_v52 = vsub.s32 %v384_v49, %v386_v50 }
  0x17   : > { %vm203_vm7 = vcmp.lt.s32.totalorder %v202_v44, 16  ;;  %s3060_s15 = scalar_lea.sflag [#allocation3], %s183_s21  ;;  %p2507_p13 = pnand %p2506_p12, %p2653_p4 }
  0x18   : > { %s2209_s8 = sshll.u32 %s187_s7, 5  ;;  %v204_v48 = vsel %vm203_vm7, 0.5, %v2589_v47  ;;  %s2509_s7 = sshll.u32 %s2590_s6, 4  ;;  %s2510_s7 = int_to_ptr.vmem [resolvable:$false] %s2509_s7 }
  0x19   : > { %s2697_s11 = scalar_lea.vmem %s3106_s0, %s2209_s8  ;;  %v2750_v51 = vmul.f32 0.5, %v204_v48  ;;  %p2508_p0 = pneg %p2507_p13 }
  0x1a   : > { %v205_v8 = vld [vmem:[%s2697_s11] sm:$0x1]  ;;  %v206_v9 = vld [vmem:[%s2697_s11 + $0x8] sm:$0x1]  ;;  %v207_v10 = vld [vmem:[%s2697_s11 + $0x10] sm:$0x1]  ;;  %p2512_p1 = scmp.lt.s32.totalorder %s3048_s28, %s2510_s7 }
  0x1b   : > { %v208_v11 = vld [vmem:[%s2697_s11 + $0x18] sm:$0x1]  ;;  %v213_v12 = vrot.slane %v206_v9, 7  ;;  %v216_v13 = vrot.slane %v207_v10, 6  ;;  %v448_v18 = vld [vmem:[%s2697_s11 + $0x9] sm:$0x1] }
  0x1c   : > { %v219_v14 = vrot.slane %v208_v11, 5  ;;  %v449_v19 = vld [vmem:[%s2697_s11 + $0x11] sm:$0x1]  ;;  %v455_v20 = vrot.slane %v448_v18, 7  ;;  %v447_v21 = vld [vmem:[%s2697_s11 + $0x1] sm:$0x1] }
  0x1d   : > { %v215_v15 = vsel %vm214_vm1, %v213_v12, %v205_v8  ;;  %v450_v24 = vld [vmem:[%s2697_s11 + $0x19] sm:$0x1]  ;;  %v457_v25 = vrot.slane %v449_v19, 6  ;;  %v682_v28 = vld [vmem:[%s2697_s11 + $0xa] sm:$0x1]  ;;  %s2511_s8 = scalar_lea.vmem %s2510_s7, 2048 }
  0x1e   : > { %v218_v16 = vsel %vm217_vm2, %v216_v13, %v215_v15  ;;  %v456_v27 = vsel %vm214_vm1, %v455_v20, %v447_v21  ;;  %v459_v29 = vrot.slane %v450_v24, 5  ;;  %v683_v31 = vld [vmem:[%s2697_s11 + $0x12] sm:$0x1]  ;;  %v689_v32 = vrot.slane %v682_v28, 7  ;;  %v681_v33 = vld [vmem:[%s2697_s11 + $0x2] sm:$0x1]  ;;  %p2513_p2 = scmp.lt.s32.totalorder %s2511_s8, %s2505_s5 }
  0x1f   : > { %v221_v17 = vsel %vm220_vm3, %v219_v14, %v218_v16  ;;  %v458_v30 = vsel %vm217_vm2, %v457_v25, %v456_v27  ;;  %v684_v35 = vld [vmem:[%s2697_s11 + $0x1a] sm:$0x1]  ;;  %v691_v36 = vrot.slane %v683_v31, 6  ;;  %v915_v10 = vld [vmem:[%s2697_s11 + $0xb] sm:$0x1] }
  0x20   : > { %2276 = vmatmul.mubr.msk.f32.vlgmr.msra.gmra.mrb[0].mxu0 %vm222_vm4, %v221_v17  ;;  %v460_v34 = vsel %vm220_vm3, %v459_v29, %v458_v30  ;;  %v690_v37 = vsel %vm214_vm1, %v689_v32, %v681_v33  ;;  %v693_v38 = vrot.slane %v684_v35, 5  ;;  %v916_v12 = vld [vmem:[%s2697_s11 + $0x13] sm:$0x1]  ;;  %v922_v13 = vrot.slane %v915_v10, 7  ;;  %v914_v14 = vld [vmem:[%s2697_s11 + $0x3] sm:$0x1]  ;;  %p2514_p3 = por %p2513_p2, %p2512_p1 }
  0x21   : > { %2296 = vmatprep.mubr.msk.f32.mxu0 %vm2586_vm0, %v2587_v6  ;;  %v692_v39 = vsel %vm217_vm2, %v691_v36, %v690_v37  ;;  %v917_v16 = vld [vmem:[%s2697_s11 + $0x1b] sm:$0x1]  ;;  %v924_v17 = vrot.slane %v916_v12, 6  ;;  %v1148_v42 = vld [vmem:[%s2697_s11 + $0xc] sm:$0x1] }
  0x22   : > { %v694_v40 = vsel %vm220_vm3, %v693_v38, %v692_v39  ;;  %v923_v19 = vsel %vm214_vm1, %v922_v13, %v914_v14  ;;  %v926_v20 = vrot.slane %v917_v16, 5  ;;  %v1149_v49 = vld [vmem:[%s2697_s11 + $0x14] sm:$0x1]  ;;  %v1155_v50 = vrot.slane %v1148_v42, 7  ;;  %v1381_v13 = vld [vmem:[%s2697_s11 + $0xd] sm:$0x1]  ;;  %p2515_p5 = pnand %p2514_p3, %p2508_p0 }
  0x23   : > { %v925_v21 = vsel %vm217_vm2, %v924_v17, %v923_v19  ;;  %v1382_v19 = vld [vmem:[%s2697_s11 + $0x15] sm:$0x1]  ;;  %v1614_v42 = vld [vmem:[%s2697_s11 + $0xe] sm:$0x1] }
  0xf3   : > { %v291_v23 = vpop.f32.mrb[0].mxu0 }
  0xf4   : > { %v2277_v26 = vpop.f32.mrb[1].mxu0  ;;  %2279 = vmatpush3.msk.msra.mxu1 %vm299_vm5, %v291_v23  ;;  %v927_v23 = vsel %vm220_vm3, %v926_v20, %v925_v21  ;;  %v1388_v20 = vrot.slane %v1381_v13, 7  ;;  %v1380_v21 = vld [vmem:[%s2697_s11 + $0x5] sm:$0x1] }
  0xf5   : > { %2281 = vmatmul.mubr.msk.f32.vlgmr.msra.gmra.mrb[0].mxu1 %vm295_vm6, %v2717_v22  ;;  %2401 = vmatprep.subr.bf16.mxu1 %v2585_v3 }
  0xf6   : > { %2403 = vmatpush3.bf16.msra.mxu1 %v2678_v4  ;;  %2291 = vmatprep.mubr.msk.f32.mxu1 %vm2586_vm0, %v2587_v6 }
  0xf7   : > { %2404 = vmatprep.subr.bf16.mxu1 %v2585_v3 }
  0xfa   : > { %2406 = vmatpush3.bf16.msra.mxu1 %v2690_v7 }
  0xfb   : > { %2407 = vmatprep.subr.bf16.mxu1 %v2585_v3 }
  0xfd   : > { %2292 = vmatmul.mubr.msk.f32.vlgmr.msra.gmra.mrb[2].mxu1 %vm222_vm4, %v460_v34 }
  0xfe   : > { %2409 = vmatpush3.bf16.msra.mxu1 %v2678_v4  ;;  %2307 = vmatprep.mubr.msk.f32.mxu1 %vm2586_vm0, %v2587_v6 }
  0xff   : > { %2410 = vmatprep.subr.bf16.mxu1 %v2585_v3 }
 0x102   : > { %2412 = vmatpush3.bf16.msra.mxu1 %v2690_v7 }
 0x103   : > { %2326 = vmatprep.subr.mxu1 %v2587_v6 }
 0x105   : > { %2308 = vmatmul.mubr.msk.f32.vlgmr.msra.gmra.mrb[4].mxu1 %vm222_vm4, %v694_v40 }
 0x106   : > { %2328 = vmatprep.mubr.msk.f32.mxu1 %vm2586_vm0, %v2587_v6 }
 0x1c8   : > { %v369_v53 = vpop.f32.mrb[0].mxu1 }
 0x1c9   : > { %v379_v54 = vmul.f32 %v2750_v51, %v369_v53  ;;  %v2282_v55 = vpop.f32.mrb[1].mxu1  ;;  %v1147_v53 = vld [vmem:[%s2697_s11 + $0x4] sm:$0x1] }
 0x1cb   : > { %v381_v56 = vcombine.high %v379_v54, %v379_v54  ;;  %v388_v57 = vrot.slane %v379_v54, %v2753_v52 }
 0x1cd   : > { %v395_v58 = vrot.slane %v381_v56, %v2753_v52  ;;  %v396_v59 = vcombine.high %v388_v57, %v388_v57  ;;  %v404_v60 = vrot.slane %v388_v57, %v2753_v52 }
 0x1cf   : > { %v397_v61 = vcombine.high %v395_v58, %v395_v58  ;;  %v411_v62 = vrot.slane %v395_v58, %v2753_v52  ;;  %v418_v63 = vrot.slane %v396_v59, %v2753_v52  ;;  %v426_v0 = vcombine.high %v404_v60, %v404_v60  ;;  %439 = vst.msk [vmem:[%s2763_s26] sm:$0x1] %vm438_vm8, %v404_v60  ;;  %v1150_v59 = vld [vmem:[%s2697_s11 + $0x1c] sm:$0x1] }
 0x1d0   : > { %v529_v1 = vpop.f32.mrb[2].mxu1  ;;  %v1157_v60 = vrot.slane %v1149_v49, 6  ;;  %v1621_v49 = vrot.slane %v1614_v42, 7 }
 0x1d1   : > { %v425_v2 = vrot.slane %v397_v61, %v2753_v52  ;;  %v427_v5 = vcombine.high %v411_v62, %v411_v62  ;;  %v428_v8 = vcombine.high %v418_v63, %v418_v63  ;;  %440 = vst.msk [vmem:[%s2763_s26 + $0x8] sm:$0x1] %vm438_vm8, %v418_v63  ;;  %441 = vst.msk [vmem:[%s2763_s26 + $0x10] sm:$0x1] %vm438_vm8, %v426_v0  ;;  %v2293_v9 = vpop.f32.mrb[3].mxu1  ;;  %2295 = vmatpush3.msk.msra.mxu0 %vm299_vm5, %v529_v1 }
 0x1d2   : > { %443 = vst.msk [vmem:[%s2763_s26 + $0x20] sm:$0x1] %vm438_vm8, %v411_v62  ;;  %2297 = vmatmul.mubr.msk.f32.vlgmr.msra.gmra.mrb[2].mxu0 %vm295_vm6, %v2717_v22  ;;  %2310 = vmatprep.subr.mxu0 %v2587_v6  ;;  %v1156_v1 = vsel %vm214_vm1, %v1155_v50, %v1147_v53  ;;  %v1613_v50 = vld [vmem:[%s2697_s11 + $0x6] sm:$0x1] }
 0x1d3   : > { %v429_v11 = vcombine.high %v425_v2, %v425_v2  ;;  %442 = vst.msk [vmem:[%s2763_s26 + $0x18] sm:$0x1] %vm438_vm8, %v428_v8  ;;  %444 = vst.msk [vmem:[%s2763_s26 + $0x28] sm:$0x1] %vm438_vm8, %v425_v2  ;;  %2312 = vmatprep.mubr.msk.f32.mxu0 %vm2586_vm0, %v2587_v6  ;;  %v1158_v8 = vsel %vm217_vm2, %v1157_v60, %v1156_v1 }
 0x1d4   : > { %445 = vst.msk [vmem:[%s2763_s26 + $0x30] sm:$0x1] %vm438_vm8, %v427_v5  ;;  %v1159_v5 = vrot.slane %v1150_v59, 5 }
 0x1d5   : > { %446 = vst.msk [vmem:[%s2763_s26 + $0x38] sm:$0x1] %vm438_vm8, %v429_v11 }
 0x1d6   : > { %v1160_v9 = vsel %vm220_vm3, %v1159_v5, %v1158_v8 }
 0x1d8   : > { %v763_v15 = vpop.f32.mrb[4].mxu1 }
 0x1d9   : > { %v2309_v18 = vpop.f32.mrb[5].mxu1  ;;  %2311 = vmatpush3.msk.msra.mxu0 %vm299_vm5, %v763_v15 }
 0x1da   : > { %2313 = vmatmul.mubr.msk.f32.vlgmr.msra.gmra.mrb[4].mxu0 %vm295_vm6, %v2717_v22  ;;  %2413 = vmatprep.subr.bf16.mxu0 %v2585_v3 }
 0x1db   : > { %2415 = vmatpush3.bf16.msra.mxu0 %v2678_v4  ;;  %2323 = vmatprep.mubr.msk.f32.mxu0 %vm2586_vm0, %v2587_v6 }
 0x1dc   : > { %2416 = vmatprep.subr.bf16.mxu0 %v2585_v3 }
 0x1df   : > { %2418 = vmatpush3.bf16.msra.mxu0 %v2690_v7 }
 0x1e0   : > { %2342 = vmatprep.subr.mxu0 %v2587_v6 }
 0x1e2   : > { %2324 = vmatmul.mubr.msk.f32.vlgmr.msra.gmra.mrb[6].mxu0 %vm222_vm4, %v927_v23 }
 0x1e3   : > { %2344 = vmatprep.mubr.msk.f32.mxu0 %vm2586_vm0, %v2587_v6 }
 0x2a5   : > { %v602_v24 = vpop.f32.mrb[2].mxu0 }
 0x2a6   : > { %v614_v25 = vmul.f32 %v602_v24, %v2750_v51  ;;  %v2298_v26 = vpop.f32.mrb[3].mxu0 }
 0x2a8   : > { %v616_v27 = vcombine.high %v614_v25, %v614_v25  ;;  %v623_v28 = vrot.slane %v614_v25, %v2753_v52 }
 0x2aa   : > { %v630_v29 = vrot.slane %v616_v27, %v2753_v52  ;;  %v631_v30 = vcombine.high %v623_v28, %v623_v28  ;;  %v639_v31 = vrot.slane %v623_v28, %v2753_v52  ;;  %v1383_v28 = vld [vmem:[%s2697_s11 + $0x1d] sm:$0x1] }
 0x2ac   : > { %v632_v32 = vcombine.high %v630_v29, %v630_v29  ;;  %v646_v33 = vrot.slane %v630_v29, %v2753_v52  ;;  %v653_v34 = vrot.slane %v631_v30, %v2753_v52  ;;  %v661_v35 = vcombine.high %v639_v31, %v639_v31  ;;  %673 = vst.msk [vmem:[%s2763_s26 + $0x1] sm:$0x1] %vm438_vm8, %v639_v31 }
 0x2ad   : > { %v836_v36 = vpop.f32.mrb[4].mxu0  ;;  %v1390_v29 = vrot.slane %v1382_v19, 6 }
 0x2ae   : > { %v660_v37 = vrot.slane %v632_v32, %v2753_v52  ;;  %v662_v38 = vcombine.high %v646_v33, %v646_v33  ;;  %v663_v39 = vcombine.high %v653_v34, %v653_v34  ;;  %674 = vst.msk [vmem:[%s2763_s26 + $0x9] sm:$0x1] %vm438_vm8, %v653_v34  ;;  %675 = vst.msk [vmem:[%s2763_s26 + $0x11] sm:$0x1] %vm438_vm8, %v661_v35  ;;  %v2314_v41 = vpop.f32.mrb[5].mxu0 }
 0x2af   : > { %677 = vst.msk [vmem:[%s2763_s26 + $0x21] sm:$0x1] %vm438_vm8, %v646_v33  ;;  %v847_v40 = vmul.f32 %v836_v36, %v2750_v51  ;;  %v1389_v34 = vsel %vm214_vm1, %v1388_v20, %v1380_v21  ;;  %v1392_v36 = vrot.slane %v1383_v28, 5  ;;  %v1846_v20 = vld [vmem:[%s2697_s11 + $0x7] sm:$0x1] }
 0x2b0   : > { %v664_v43 = vcombine.high %v660_v37, %v660_v37  ;;  %676 = vst.msk [vmem:[%s2763_s26 + $0x19] sm:$0x1] %vm438_vm8, %v663_v39  ;;  %678 = vst.msk [vmem:[%s2763_s26 + $0x29] sm:$0x1] %vm438_vm8, %v660_v37  ;;  %v1391_v37 = vsel %vm217_vm2, %v1390_v29, %v1389_v34 }
 0x2b1   : > { %679 = vst.msk [vmem:[%s2763_s26 + $0x31] sm:$0x1] %vm438_vm8, %v662_v38  ;;  %v849_v44 = vcombine.high %v847_v40, %v847_v40  ;;  %v856_v45 = vrot.slane %v847_v40, %v2753_v52  ;;  %v1393_v38 = vsel %vm220_vm3, %v1392_v36, %v1391_v37 }
 0x2b2   : > { %680 = vst.msk [vmem:[%s2763_s26 + $0x39] sm:$0x1] %vm438_vm8, %v664_v43 }
 0x2b3   : > { %v863_v46 = vrot.slane %v849_v44, %v2753_v52  ;;  %v864_v47 = vcombine.high %v856_v45, %v856_v45  ;;  %v872_v48 = vrot.slane %v856_v45, %v2753_v52 }
 0x2b5   : > { %v865_v54 = vcombine.high %v863_v46, %v863_v46  ;;  %v879_v55 = vrot.slane %v863_v46, %v2753_v52  ;;  %v886_v56 = vrot.slane %v864_v47, %v2753_v52  ;;  %v894_v57 = vcombine.high %v872_v48, %v872_v48  ;;  %906 = vst.msk [vmem:[%s2763_s26 + $0x2] sm:$0x1] %vm438_vm8, %v872_v48  ;;  %v996_v58 = vpop.f32.mrb[6].mxu0  ;;  %v1615_v48 = vld [vmem:[%s2697_s11 + $0x16] sm:$0x1] }
 0x2b6   : > { %v2325_v0 = vpop.f32.mrb[7].mxu0  ;;  %2327 = vmatpush3.msk.msra.mxu1 %vm299_vm5, %v996_v58  ;;  %v1616_v58 = vld [vmem:[%s2697_s11 + $0x1e] sm:$0x1]  ;;  %v1623_v59 = vrot.slane %v1615_v48, 6 }
 0x2b7   : > { %v893_v61 = vrot.slane %v865_v54, %v2753_v52  ;;  %v895_v62 = vcombine.high %v879_v55, %v879_v55  ;;  %v896_v63 = vcombine.high %v886_v56, %v886_v56  ;;  %907 = vst.msk [vmem:[%s2763_s26 + $0xa] sm:$0x1] %vm438_vm8, %v886_v56  ;;  %908 = vst.msk [vmem:[%s2763_s26 + $0x12] sm:$0x1] %vm438_vm8, %v894_v57  ;;  %2329 = vmatmul.mubr.msk.f32.vlgmr.msra.gmra.mrb[6].mxu1 %vm295_vm6, %v2717_v22 }
 0x2b8   : > { %910 = vst.msk [vmem:[%s2763_s26 + $0x22] sm:$0x1] %vm438_vm8, %v879_v55  ;;  %2419 = vmatprep.subr.bf16.mxu1 %v2585_v3  ;;  %2339 = vmatprep.mubr.msk.f32.mxu1 %vm2586_vm0, %v2587_v6  ;;  %v1622_v0 = vsel %vm214_vm1, %v1621_v49, %v1613_v50 }
 0x2b9   : > { %v897_v2 = vcombine.high %v893_v61, %v893_v61  ;;  %909 = vst.msk [vmem:[%s2763_s26 + $0x1a] sm:$0x1] %vm438_vm8, %v896_v63  ;;  %911 = vst.msk [vmem:[%s2763_s26 + $0x2a] sm:$0x1] %vm438_vm8, %v893_v61  ;;  %2421 = vmatpush3.bf16.msra.mxu1 %v2678_v4  ;;  %v1624_v5 = vsel %vm217_vm2, %v1623_v59, %v1622_v0 }
 0x2ba   : > { %912 = vst.msk [vmem:[%s2763_s26 + $0x32] sm:$0x1] %vm438_vm8, %v895_v62  ;;  %2422 = vmatprep.subr.bf16.mxu1 %v2585_v3 }
 0x2bb   : > { %913 = vst.msk [vmem:[%s2763_s26 + $0x3a] sm:$0x1] %vm438_vm8, %v897_v2  ;;  %v1625_v2 = vrot.slane %v1616_v58, 5 }
 0x2bd   : > { %2424 = vmatpush3.bf16.msra.mxu1 %v2690_v7  ;;  %v1626_v8 = vsel %vm220_vm3, %v1625_v2, %v1624_v5 }
 0x2be   : > { %2358 = vmatprep.subr.mxu1 %v2587_v6 }
 0x2c0   : > { %2340 = vmatmul.mubr.msk.f32.vlgmr.msra.gmra.mrb[8].mxu1 %vm222_vm4, %v1160_v9 }
 0x2c1   : > { %2360 = vmatprep.mubr.msk.f32.mxu1 %vm2586_vm0, %v2587_v6 }
 0x38a   : > { %v1069_v10 = vpop.f32.mrb[6].mxu1 }
 0x38b   : > { %v1080_v11 = vmul.f32 %v1069_v10, %v2750_v51  ;;  %v2330_v12 = vpop.f32.mrb[7].mxu1 }
 0x38c   : > { %v1847_v12 = vld [vmem:[%s2697_s11 + $0xf] sm:$0x1] }
 0x38d   : > { %v1082_v14 = vcombine.high %v1080_v11, %v1080_v11  ;;  %v1089_v15 = vrot.slane %v1080_v11, %v2753_v52  ;;  %v1854_v19 = vrot.slane %v1847_v12, 7 }
 0x38f   : > { %v1096_v16 = vrot.slane %v1082_v14, %v2753_v52  ;;  %v1097_v17 = vcombine.high %v1089_v15, %v1089_v15  ;;  %v1105_v18 = vrot.slane %v1089_v15, %v2753_v52 }
 0x391   : > { %v1098_v23 = vcombine.high %v1096_v16, %v1096_v16  ;;  %v1112_v24 = vrot.slane %v1096_v16, %v2753_v52  ;;  %v1119_v25 = vrot.slane %v1097_v17, %v2753_v52  ;;  %v1127_v26 = vcombine.high %v1105_v18, %v1105_v18  ;;  %1139 = vst.msk [vmem:[%s2763_s26 + $0x3] sm:$0x1] %vm438_vm8, %v1105_v18  ;;  %v1848_v18 = vld [vmem:[%s2697_s11 + $0x17] sm:$0x1] }
 0x392   : > { %v1856_v28 = vrot.slane %v1848_v18, 6 }
 0x393   : > { %v1229_v27 = vpop.f32.mrb[8].mxu1  ;;  %v1126_v30 = vrot.slane %v1098_v23, %v2753_v52  ;;  %v1128_v31 = vcombine.high %v1112_v24, %v1112_v24  ;;  %v1129_v32 = vcombine.high %v1119_v25, %v1119_v25  ;;  %1140 = vst.msk [vmem:[%s2763_s26 + $0xb] sm:$0x1] %vm438_vm8, %v1119_v25  ;;  %1141 = vst.msk [vmem:[%s2763_s26 + $0x13] sm:$0x1] %vm438_vm8, %v1127_v26 }
 0x394   : > { %1143 = vst.msk [vmem:[%s2763_s26 + $0x23] sm:$0x1] %vm438_vm8, %v1112_v24  ;;  %v2341_v33 = vpop.f32.mrb[9].mxu1  ;;  %2343 = vmatpush3.msk.msra.mxu0 %vm299_vm5, %v1229_v27  ;;  %v1849_v27 = vld [vmem:[%s2697_s11 + $0x1f] sm:$0x1] }
 0x395   : > { %2345 = vmatmul.mubr.msk.f32.vlgmr.msra.gmra.mrb[8].mxu0 %vm295_vm6, %v2717_v22  ;;  %2425 = vmatprep.subr.bf16.mxu0 %v2585_v3  ;;  %v1130_v35 = vcombine.high %v1126_v30, %v1126_v30  ;;  %1142 = vst.msk [vmem:[%s2763_s26 + $0x1b] sm:$0x1] %vm438_vm8, %v1129_v32  ;;  %1144 = vst.msk [vmem:[%s2763_s26 + $0x2b] sm:$0x1] %vm438_vm8, %v1126_v30  ;;  %v1855_v33 = vsel %vm214_vm1, %v1854_v19, %v1846_v20 }
 0x396   : > { %1145 = vst.msk [vmem:[%s2763_s26 + $0x33] sm:$0x1] %vm438_vm8, %v1128_v31  ;;  %2427 = vmatpush3.bf16.msra.mxu0 %v2678_v4  ;;  %2355 = vmatprep.mubr.msk.f32.mxu0 %vm2586_vm0, %v2587_v6  ;;  %v1857_v36 = vsel %vm217_vm2, %v1856_v28, %v1855_v33 }
 0x397   : > { %2428 = vmatprep.subr.bf16.mxu0 %v2585_v3  ;;  %1146 = vst.msk [vmem:[%s2763_s26 + $0x3b] sm:$0x1] %vm438_vm8, %v1130_v35  ;;  %v1858_v35 = vrot.slane %v1849_v27, 5 }
 0x399   : > { %v1859_v37 = vsel %vm220_vm3, %v1858_v35, %v1857_v36 }
 0x39a   : > { %2430 = vmatpush3.bf16.msra.mxu0 %v2690_v7 }
 0x39b   : > { %2374 = vmatprep.subr.mxu0 %v2587_v6 }
 0x39d   : > { %2356 = vmatmul.mubr.msk.f32.vlgmr.msra.gmra.mrb[10].mxu0 %vm222_vm4, %v1393_v38 }
 0x39e   : > { %2376 = vmatprep.mubr.msk.f32.mxu0 %vm2586_vm0, %v2587_v6 }
 0x468   : > { %v1302_v39 = vpop.f32.mrb[8].mxu0 }
 0x469   : > { %v1313_v40 = vmul.f32 %v1302_v39, %v2750_v51  ;;  %v2346_v41 = vpop.f32.mrb[9].mxu0 }
 0x46b   : > { %v1315_v43 = vcombine.high %v1313_v40, %v1313_v40  ;;  %v1322_v44 = vrot.slane %v1313_v40, %v2753_v52 }
 0x46d   : > { %v1329_v45 = vrot.slane %v1315_v43, %v2753_v52  ;;  %v1330_v46 = vcombine.high %v1322_v44, %v1322_v44  ;;  %v1338_v47 = vrot.slane %v1322_v44, %v2753_v52 }
 0x46f   : > { %v1331_v53 = vcombine.high %v1329_v45, %v1329_v45  ;;  %v1345_v54 = vrot.slane %v1329_v45, %v2753_v52  ;;  %v1352_v55 = vrot.slane %v1330_v46, %v2753_v52  ;;  %v1360_v56 = vcombine.high %v1338_v47, %v1338_v47  ;;  %1372 = vst.msk [vmem:[%s2763_s26 + $0x4] sm:$0x1] %vm438_vm8, %v1338_v47 }
 0x470   : > { %v1462_v57 = vpop.f32.mrb[10].mxu0 }
 0x471   : > { %v1359_v60 = vrot.slane %v1331_v53, %v2753_v52  ;;  %v1361_v61 = vcombine.high %v1345_v54, %v1345_v54  ;;  %v1362_v62 = vcombine.high %v1352_v55, %v1352_v55  ;;  %1373 = vst.msk [vmem:[%s2763_s26 + $0xc] sm:$0x1] %vm438_vm8, %v1352_v55  ;;  %1374 = vst.msk [vmem:[%s2763_s26 + $0x14] sm:$0x1] %vm438_vm8, %v1360_v56  ;;  %v2357_v63 = vpop.f32.mrb[11].mxu0  ;;  %2359 = vmatpush3.msk.msra.mxu1 %vm299_vm5, %v1462_v57 }
 0x472   : > { %1376 = vst.msk [vmem:[%s2763_s26 + $0x24] sm:$0x1] %vm438_vm8, %v1345_v54  ;;  %2361 = vmatmul.mubr.msk.f32.vlgmr.msra.gmra.mrb[10].mxu1 %vm295_vm6, %v2717_v22  ;;  %2431 = vmatprep.subr.bf16.mxu1 %v2585_v3 }
 0x473   : > { %v1363_v1 = vcombine.high %v1359_v60, %v1359_v60  ;;  %1375 = vst.msk [vmem:[%s2763_s26 + $0x1c] sm:$0x1] %vm438_vm8, %v1362_v62  ;;  %1377 = vst.msk [vmem:[%s2763_s26 + $0x2c] sm:$0x1] %vm438_vm8, %v1359_v60  ;;  %2433 = vmatpush3.bf16.msra.mxu1 %v2678_v4  ;;  %2371 = vmatprep.mubr.msk.f32.mxu1 %vm2586_vm0, %v2587_v6 }
 0x474   : > { %1378 = vst.msk [vmem:[%s2763_s26 + $0x34] sm:$0x1] %vm438_vm8, %v1361_v61  ;;  %2434 = vmatprep.subr.bf16.mxu1 %v2585_v3 }
 0x475   : > { %1379 = vst.msk [vmem:[%s2763_s26 + $0x3c] sm:$0x1] %vm438_vm8, %v1363_v1 }
 0x477   : > { %2436 = vmatpush3.bf16.msra.mxu1 %v2690_v7 }
 0x478   : > { %2390 = vmatprep.subr.mxu1 %v2587_v6 }
 0x47a   : > { %2372 = vmatmul.mubr.msk.f32.vlgmr.msra.gmra.mrb[12].mxu1 %vm222_vm4, %v1626_v8 }
 0x47b   : > { %2392 = vmatprep.mubr.msk.f32.mxu1 %vm2586_vm0, %v2587_v6 }
 0x545   : > { %v1535_v9 = vpop.f32.mrb[10].mxu1 }
 0x546   : > { %v1546_v10 = vmul.f32 %v1535_v9, %v2750_v51  ;;  %v2362_v11 = vpop.f32.mrb[11].mxu1 }
 0x548   : > { %v1548_v13 = vcombine.high %v1546_v10, %v1546_v10  ;;  %v1555_v14 = vrot.slane %v1546_v10, %v2753_v52 }
 0x54a   : > { %v1562_v15 = vrot.slane %v1548_v13, %v2753_v52  ;;  %v1563_v16 = vcombine.high %v1555_v14, %v1555_v14  ;;  %v1571_v17 = vrot.slane %v1555_v14, %v2753_v52 }
 0x54c   : > { %v1564_v21 = vcombine.high %v1562_v15, %v1562_v15  ;;  %v1578_v23 = vrot.slane %v1562_v15, %v2753_v52  ;;  %v1585_v24 = vrot.slane %v1563_v16, %v2753_v52  ;;  %v1593_v25 = vcombine.high %v1571_v17, %v1571_v17  ;;  %1605 = vst.msk [vmem:[%s2763_s26 + $0x5] sm:$0x1] %vm438_vm8, %v1571_v17 }
 0x54d   : > { %v1695_v26 = vpop.f32.mrb[12].mxu1 }
 0x54e   : > { %v1592_v29 = vrot.slane %v1564_v21, %v2753_v52  ;;  %v1594_v30 = vcombine.high %v1578_v23, %v1578_v23  ;;  %v1595_v31 = vcombine.high %v1585_v24, %v1585_v24  ;;  %1606 = vst.msk [vmem:[%s2763_s26 + $0xd] sm:$0x1] %vm438_vm8, %v1585_v24  ;;  %1607 = vst.msk [vmem:[%s2763_s26 + $0x15] sm:$0x1] %vm438_vm8, %v1593_v25  ;;  %v2373_v32 = vpop.f32.mrb[13].mxu1  ;;  %2375 = vmatpush3.msk.msra.mxu0 %vm299_vm5, %v1695_v26 }
 0x54f   : > { %1609 = vst.msk [vmem:[%s2763_s26 + $0x25] sm:$0x1] %vm438_vm8, %v1578_v23  ;;  %2377 = vmatmul.mubr.msk.f32.vlgmr.msra.gmra.mrb[12].mxu0 %vm295_vm6, %v2717_v22  ;;  %2437 = vmatprep.subr.bf16.mxu0 %v2585_v3 }
 0x550   : > { %v1596_v34 = vcombine.high %v1592_v29, %v1592_v29  ;;  %1608 = vst.msk [vmem:[%s2763_s26 + $0x1d] sm:$0x1] %vm438_vm8, %v1595_v31  ;;  %1610 = vst.msk [vmem:[%s2763_s26 + $0x2d] sm:$0x1] %vm438_vm8, %v1592_v29  ;;  %2439 = vmatpush3.bf16.msra.mxu0 %v2678_v4  ;;  %2387 = vmatprep.mubr.msk.f32.mxu0 %vm2586_vm0, %v2587_v6 }
 0x551   : > { %1611 = vst.msk [vmem:[%s2763_s26 + $0x35] sm:$0x1] %vm438_vm8, %v1594_v30  ;;  %2440 = vmatprep.subr.bf16.mxu0 %v2585_v3 }
 0x552   : > { %1612 = vst.msk [vmem:[%s2763_s26 + $0x3d] sm:$0x1] %vm438_vm8, %v1596_v34 }
 0x554   : > { %2442 = vmatpush3.bf16.msra.mxu0 %v2690_v7 }
 0x557   : > { %2388 = vmatmul.mubr.msk.f32.vlgmr.msra.gmra.mrb[14].mxu0 %vm222_vm4, %v1859_v37 }
 0x622   : > { %v1768_v38 = vpop.f32.mrb[12].mxu0 }
 0x623   : > { %v1779_v4 = vmul.f32 %v1768_v38, %v2750_v51  ;;  %v2378_v39 = vpop.f32.mrb[13].mxu0 }
 0x625   : > { %v1781_v6 = vcombine.high %v1779_v4, %v1779_v4  ;;  %v1788_v3 = vrot.slane %v1779_v4, %v2753_v52 }
 0x627   : > { %v1795_v40 = vrot.slane %v1781_v6, %v2753_v52  ;;  %v1796_v41 = vcombine.high %v1788_v3, %v1788_v3  ;;  %v1804_v42 = vrot.slane %v1788_v3, %v2753_v52 }
 0x629   : > { %v1797_v7 = vcombine.high %v1795_v40, %v1795_v40  ;;  %v1811_v43 = vrot.slane %v1795_v40, %v2753_v52  ;;  %v1818_v44 = vrot.slane %v1796_v41, %v2753_v52  ;;  %v1826_v45 = vcombine.high %v1804_v42, %v1804_v42  ;;  %1838 = vst.msk [vmem:[%s2763_s26 + $0x6] sm:$0x1] %vm438_vm8, %v1804_v42 }
 0x62a   : > { %v1928_v46 = vpop.f32.mrb[14].mxu0 }
 0x62b   : > { %v1825_v47 = vrot.slane %v1797_v7, %v2753_v52  ;;  %v1827_v48 = vcombine.high %v1811_v43, %v1811_v43  ;;  %v1828_v49 = vcombine.high %v1818_v44, %v1818_v44  ;;  %1839 = vst.msk [vmem:[%s2763_s26 + $0xe] sm:$0x1] %vm438_vm8, %v1818_v44  ;;  %1840 = vst.msk [vmem:[%s2763_s26 + $0x16] sm:$0x1] %vm438_vm8, %v1826_v45  ;;  %v2389_v50 = vpop.f32.mrb[15].mxu0  ;;  %2391 = vmatpush3.msk.msra.mxu1 %vm299_vm5, %v1928_v46 }
 0x62c   : > { %1842 = vst.msk [vmem:[%s2763_s26 + $0x26] sm:$0x1] %vm438_vm8, %v1811_v43  ;;  %2393 = vmatmul.mubr.msk.f32.vlgmr.msra.gmra.mrb[14].mxu1 %vm295_vm6, %v2717_v22 }
 0x62d   : > { %v1829_v53 = vcombine.high %v1825_v47, %v1825_v47  ;;  %1841 = vst.msk [vmem:[%s2763_s26 + $0x1e] sm:$0x1] %vm438_vm8, %v1828_v49  ;;  %1843 = vst.msk [vmem:[%s2763_s26 + $0x2e] sm:$0x1] %vm438_vm8, %v1825_v47 }
 0x62e   : > { %1844 = vst.msk [vmem:[%s2763_s26 + $0x36] sm:$0x1] %vm438_vm8, %v1827_v48 }
 0x62f   : > { %1845 = vst.msk [vmem:[%s2763_s26 + $0x3e] sm:$0x1] %vm438_vm8, %v1829_v53 }
 0x6ff   : > { %v2001_v54 = vpop.f32.mrb[14].mxu1 }
 0x700   : > { %v2012_v55 = vmul.f32 %v2001_v54, %v2750_v51  ;;  %v2394_v56 = vpop.f32.mrb[15].mxu1 }
 0x702   : > { %v2014_v57 = vcombine.high %v2012_v55, %v2012_v55  ;;  %v2021_v22 = vrot.slane %v2012_v55, %v2753_v52 }
 0x704   : > { %v2028_v58 = vrot.slane %v2014_v57, %v2753_v52  ;;  %v2029_v59 = vcombine.high %v2021_v22, %v2021_v22  ;;  %v2037_v60 = vrot.slane %v2021_v22, %v2753_v52 }
 0x706   : > { %v2030_v61 = vcombine.high %v2028_v58, %v2028_v58  ;;  %v2044_v62 = vrot.slane %v2028_v58, %v2753_v52  ;;  %v2051_v63 = vrot.slane %v2029_v59, %v2753_v52  ;;  %v2059_v51 = vcombine.high %v2037_v60, %v2037_v60  ;;  %2071 = vst.msk [vmem:[%s2763_s26 + $0x7] sm:$0x1] %vm438_vm8, %v2037_v60 }
 0x708   : > { %v2058_v0 = vrot.slane %v2030_v61, %v2753_v52  ;;  %v2060_v1 = vcombine.high %v2044_v62, %v2044_v62  ;;  %v2061_v2 = vcombine.high %v2051_v63, %v2051_v63  ;;  %2072 = vst.msk [vmem:[%s2763_s26 + $0xf] sm:$0x1] %vm438_vm8, %v2051_v63  ;;  %2073 = vst.msk [vmem:[%s2763_s26 + $0x17] sm:$0x1] %vm438_vm8, %v2059_v51 }
 0x709   : > { %2075 = vst.msk [vmem:[%s2763_s26 + $0x27] sm:$0x1] %vm438_vm8, %v2044_v62 }
 0x70a   : > { %v2062_v52 = vcombine.high %v2058_v0, %v2058_v0  ;;  %2074 = vst.msk [vmem:[%s2763_s26 + $0x1f] sm:$0x1] %vm438_vm8, %v2061_v2  ;;  %2076 = vst.msk [vmem:[%s2763_s26 + $0x2f] sm:$0x1] %vm438_vm8, %v2058_v0 }
 0x70b   : > { %2077 = vst.msk [vmem:[%s2763_s26 + $0x37] sm:$0x1] %vm438_vm8, %v2060_v1 }
 0x70c   : > { %2078 = vst.msk [vmem:[%s2763_s26 + $0x3f] sm:$0x1] %vm438_vm8, %v2062_v52 }
 0x70d   : > { %2518 = shalt.err (!%p2515_p5)
}
 0x70e   : > { %s2519_s9 = scalar_lea.hbm %s3046_s4, 1024  ;;  %s2523_s18 = scalar_lea.hbm %s3109_s3, 2048 }
 0x70f   : > { %p2520_p6 = scmp.ne.s32.totalorder %s3046_s4, %s2519_s9  ;;  %p2524_p10 = scmp.lt.u32.totalorder %s3046_s4, %s3109_s3 }
 0x710   : > { %p2525_p11 = scmp.lt.u32.totalorder %s2523_s18, %s2519_s9  ;;  %p2527_p13 = scmp.lt.u32.totalorder %s2519_s9, %s3046_s4 }
 0x711   : > { %p2521_p7 = pnand %p2520_p6, %p2653_p4 }
 0x712   : > { %p2526_p12 = por %p2525_p11, %p2524_p10 }
 0x713   : > { %p2522_p9 = pneg %p2521_p7 }
 0x714   : > { %p2528_p0 = por %p2527_p13, %p2526_p12 }
 0x716   : > { %p2529_p1 = pnand %p2528_p0, %p2522_p9 }
 0x718   : > { %2532 = shalt.err (!%p2529_p1)
}
 0x719   : > { %s2591_s23 = smov 128   ;;  %s2592_s26 = smov 8  }
 0x71a   : > { %2443 = dma.vmem_to_hbm [thread:$0]  (%p2653_p4), %s3048_s28, 1024, %s3046_s4, %s3060_s15, %s2591_s23, %s2591_s23, %s2592_s26  }
 0x71b PF: > { %p2449_p2 = scmp.ge.s32.totalorder %s2583_s17, 2  ;;  %s2109_s27 = sand.u32 1, %s2563_s12  }
 0x71c   : > { %s2110_s29 = scalar_lea.sflag [#allocation3], %s2109_s27 }
 0x71d   : > { %p2446_p3 = pnand %p2449_p2, %p2660_p8 }
 0x71f   : > { %2558 = dma.done.wait (!%p2446_p3), %s2110_s29, 1024  }
 0x720   : > { %2560 = vsyncadd (!%p2446_p3), %s2110_s29, 4294966272  ;;  %s16_s17 = sadd.s32 1, %s2583_s17   ;;  %s3112_s12 = smov %s2567_s13 }
 0x721   : > { %p13_p5 = scmp.ge.s32.totalorder %s16_s17, 4   ;;  %s3113_s13 = smov %s2571_s14 }
 0x722   : > { %s3114_s14 = smov %s2666_s25  ;;  %s3115_s15 = smov %s2579_s16 }
 0x723   : > { %s3116_s16 = smov %s3118_s20  ;;  %15 = sbr.rel (!%p13_p5) target bundleno = 4 (0x4), region = 67 }
 0x72a   :  { %2115 = vsyncpa [#allocation3], 1 }
 0x72b   :  { %2117 = vsyncpa [#allocation3 + $0x1], 1 }

</bundles_post_ra>
